<compile_context>
chip_gen: v6e
topology: v6e:2x2x1
jax: 0.10.0
libtpu: 0.0.40
codegen_flags: <defaults>
</compile_context>

<pallas_src>
import math

import jax
import jax.numpy as jnp
from jax.experimental import pallas as pl
from jax.experimental.pallas import tpu as pltpu


def _round_up(x, m):
    return ((x + m - 1) // m) * m


def t2v_kernel(tau_ref, w_ref, b_ref, out_ref):
    """tau_ref: (TILE_N, 1)   w_ref/b_ref: (1, K)   out_ref: (TILE_N, K).

    Pure VPU/EUP kernel: broadcast FMA + sin + lane select + single store.
    """
    tau = tau_ref[...].astype(jnp.float32)          # (TILE_N, 1)
    w = w_ref[...].astype(jnp.float32)              # (1, K)
    b = b_ref[...].astype(jnp.float32)              # (1, K)

    lin = tau * w + b                               # (TILE_N, K) broadcast FMA

    k = out_ref.shape[-1]
    lane = jax.lax.broadcasted_iota(jnp.int32, lin.shape, 1)
    # lanes [0, K-2] are the periodic (sin) features, lane K-1 is the linear one
    out = jnp.where(lane < k - 1, jnp.sin(lin), lin)

    out_ref[...] = out.astype(out_ref.dtype)


def positional_embedding(tau, w, b, w0, b0, *, tile_n=2048):
    """Flatten leading dims, run the tiled Pallas kernel, reshape back."""
    *lead, in_features = tau.shape
    # The original module's bias broadcast is only well-defined for in_features == 1.
    assert in_features == 1, "PositionalEmbedding kernel requires in_features == 1"

    n = math.prod(lead) if lead else 1
    k = w.shape[1] + 1  # out_features

    # Adaptive tile: never bigger than the (8-aligned) row count.
    tile_n = min(tile_n, max(8, _round_up(n, 8)))
    n_pad = _round_up(n, tile_n)

    tau2d = tau.reshape(n, in_features)
    if n_pad != n:
        tau2d = jnp.pad(tau2d, ((0, n_pad - n), (0, 0)))

    # Fuse parameters: [w | w0] and [b | b0], shape (1, K).
    w_full = jnp.concatenate([w, w0], axis=-1).astype(jnp.float32)
    b_full = jnp.concatenate([b, b0], axis=-1).astype(jnp.float32)

    grid = (pl.cdiv(n_pad, tile_n),)

    out2d = pl.pallas_call(
        t2v_kernel,
        out_shape=jax.ShapeDtypeStruct((n_pad, k), tau.dtype),
        grid=grid,
        in_specs=[
            pl.BlockSpec((tile_n, in_features), lambda i: (i, 0)),
            pl.BlockSpec((1, k), lambda i: (0, 0)),
            pl.BlockSpec((1, k), lambda i: (0, 0)),
        ],
        out_specs=pl.BlockSpec((tile_n, k), lambda i: (i, 0)),
        compiler_params=pltpu.CompilerParams(
            dimension_semantics=("parallel",),
        ),
    )(tau2d, w_full, b_full)

    out2d = out2d[:n]
    return out2d.reshape(*lead, k)


def init_params(key, in_features, out_features, d=0.01):
    """Deterministic uniform(-d, d) init, same shapes as the nn.Module."""
    k0, k1, k2, k3 = jax.random.split(key, 4)
    w0 = jax.random.uniform(k0, (in_features, 1), jnp.float32, -d, d)
    b0 = jax.random.uniform(k1, (in_features, 1), jnp.float32, -d, d)
    w = jax.random.uniform(k2, (in_features, out_features - 1), jnp.float32, -d, d)
    b = jax.random.uniform(k3, (in_features, out_features - 1), jnp.float32, -d, d)
    return w, b, w0, b0


if __name__ == "__main__":
    # shapes consistent with the module's forward:
    # tau: [batch=2, seq=8, in_features=1], out_features=32 (hidden)
    batch, seq, in_features, out_features = 2, 8, 1, 32

    key = jax.random.PRNGKey(0)
    k_tau, k_params = jax.random.split(key)
    tau = jax.random.normal(k_tau, (batch, seq, in_features), jnp.float32)
    w, b, w0, b0 = init_params(k_params, in_features, out_features)

    out = positional_embedding(tau, w, b, w0, b0)
    out = jax.block_until_ready(out)

    # sanity check against pure-JAX reference of the same formula
    ref = jnp.concatenate(
        [jnp.sin(jnp.matmul(tau, w) + b), jnp.matmul(tau, w0) + b0], axis=-1
    )
    assert out.shape == (batch, seq, out_features), out.shape
    assert jnp.allclose(out, ref, atol=1e-5, rtol=1e-5), "mismatch vs reference"

    print("KERNEL_OK")
</pallas_src>

<mosaic_0001>
module attributes {stable_mosaic.version = 11 : i64} {
  func.func @t2v_kernel(%arg0: i32, %arg1: memref<16x1xf32, #tpu.memory_space<vmem>>, %arg2: memref<1x32xf32, #tpu.memory_space<vmem>>, %arg3: memref<1x32xf32, #tpu.memory_space<vmem>>, %arg4: memref<16x32xf32, #tpu.memory_space<vmem>>) attributes {dimension_semantics = [#tpu.dimension_semantics<parallel>], iteration_bounds = array<i64: 1>, scalar_prefetch = 0 : i64, scratch_operands = 0 : i64, tpu.core_type = #tpu.core_type<tc>, window_params = [{transform_indices = @transform_0, window_bounds = array<i64: 16, 1>}, {pipeline_mode = #tpu.pipeline_mode<synchronous>, transform_indices = @transform_1, window_bounds = array<i64: 1, 32>}, {pipeline_mode = #tpu.pipeline_mode<synchronous>, transform_indices = @transform_2, window_bounds = array<i64: 1, 32>}, {transform_indices = @transform_3, window_bounds = array<i64: 16, 32>}]} {
    %c0 = arith.constant 0 : index
    %c0_0 = arith.constant 0 : index
    %0 = vector.load %arg1[%c0, %c0_0] : memref<16x1xf32, #tpu.memory_space<vmem>>, vector<16x1xf32>
    %c0_1 = arith.constant 0 : index
    %c0_2 = arith.constant 0 : index
    %1 = vector.load %arg2[%c0_1, %c0_2] : memref<1x32xf32, #tpu.memory_space<vmem>>, vector<1x32xf32>
    %c0_3 = arith.constant 0 : index
    %c0_4 = arith.constant 0 : index
    %2 = vector.load %arg3[%c0_3, %c0_4] : memref<1x32xf32, #tpu.memory_space<vmem>>, vector<1x32xf32>
    %3 = vector.broadcast %0 : vector<16x1xf32> to vector<16x32xf32>
    %4 = vector.broadcast %1 : vector<1x32xf32> to vector<16x32xf32>
    %5 = arith.mulf %3, %4 : vector<16x32xf32>
    %6 = vector.broadcast %2 : vector<1x32xf32> to vector<16x32xf32>
    %7 = arith.addf %5, %6 : vector<16x32xf32>
    %8 = tpu.iota {dimensions = array<i32: 1>} : vector<16x32xi32>
    %c31_i32 = arith.constant 31 : i32
    %9 = vector.broadcast %c31_i32 : i32 to vector<16x32xi32>
    %10 = arith.cmpi slt, %8, %9 : vector<16x32xi32>
    %11 = math.sin %7 : vector<16x32xf32>
    %12 = arith.select %10, %11, %7 : vector<16x32xi1>, vector<16x32xf32>
    %c0_5 = arith.constant 0 : index
    %c0_6 = arith.constant 0 : index
    %13 = vector.load %arg4[%c0_5, %c0_6] : memref<16x32xf32, #tpu.memory_space<vmem>>, vector<16x32xf32>
    tpu.vector_store %arg4[%c0_5, %c0_6], %12 {strides = array<i32>} : memref<16x32xf32, #tpu.memory_space<vmem>>, vector<16x32xf32>,
    return
  }
  func.func @transform_0(%arg0: i32) -> (i32, i32) {
    %c0_i32 = arith.constant 0 : i32
    %c0_i32_0 = arith.constant 0 : i32
    return %arg0, %c0_i32 : i32, i32
  }
  func.func @transform_1(%arg0: i32) -> (i32, i32) {
    %c0_i32 = arith.constant 0 : i32
    %c0_i32_0 = arith.constant 0 : i32
    %c0_i32_1 = arith.constant 0 : i32
    return %c0_i32, %c0_i32_0 : i32, i32
  }
  func.func @transform_2(%arg0: i32) -> (i32, i32) {
    %c0_i32 = arith.constant 0 : i32
    %c0_i32_0 = arith.constant 0 : i32
    %c0_i32_1 = arith.constant 0 : i32
    return %c0_i32, %c0_i32_0 : i32, i32
  }
  func.func @transform_3(%arg0: i32) -> (i32, i32) {
    %c0_i32 = arith.constant 0 : i32
    %c0_i32_0 = arith.constant 0 : i32
    return %arg0, %c0_i32 : i32, i32
  }
}

</mosaic_0001>

<bundles_post_ra>
// kernel: tpu_custom_call.1
= control target key start
LH: loop header
LB: loop body
LE: loop exit
PB: predicated region body
PF: predicated region fallthrough
CT: control target
= control target key end

     0   :  { %v336_v1 = vmov 0   ;;  %s455_s0 = inlined_call_operand.vmem [shape: f32[16,1], index: 0, kind: input, shape index: {}]   ;;  %s456_s1 = inlined_call_operand.vmem [shape: f32[1,32], index: 1, kind: input, shape index: {}]   ;;  %s457_s2 = inlined_call_operand.vmem [shape: f32[1,32], index: 2, kind: input, shape index: {}]   ;;  %s458_s3 = inlined_call_operand.hbm [shape: f32[16,32], index: 3, kind: output, shape index: {}]  }
   0x1   :  { %v15_v0 = vld [vmem:[%s455_s0] sm:$0xff]  ;;  %305 = vset.pattern.permute.xlu0 %v336_v1  ;;  %v16_v2 = vld [vmem:[%s455_s0 + $0x8] sm:$0xff] }
   0x2   :  { %21 = vperm.xlu0 %305, %v15_v0  }
   0x3   :  { %8 = vsyncpa [#allocation3], 0  ;;  %v277_v3 = vld [vmem:[%s456_s1] ss:$0 sm:$0xff]  ;;  %v337_v27 = vmov 683565275  }
   0x4   :  { %v278_v4 = vld [vmem:[%s457_s2] ss:$0 sm:$0xff]  ;;  %v338_v31 = vmov 2475754826   ;;  %v339_v33 = vmov 2131351028  }
   0x5   :  { %v340_v35 = vmov 2102212464   ;;  %v341_v37 = vmov 920167782   ;;  %v342_v44 = vmov 1326507024  }
   0x6   :  { %26 = vperm.xlu0 %305, %v16_v2   ;;  %s343_s0 = smov [#allocation2]  }
   0x7   :  { %s266_s1 = sshll.u32 %s343_s0, 4  ;;  %s267_s1 = int_to_ptr.vmem [resolvable:$true] %s266_s1 }
   0x8   :  { %s314_s2 = scalar_lea.vmem %s267_s1, 256  ;;  %p319_p1 = scmp.lt.s32.totalorder %s267_s1, %s267_s1 }
   0x9   :  { %p315_p0 = scmp.ne.s32.totalorder %s267_s1, %s314_s2  ;;  %p320_p2 = scmp.lt.s32.totalorder %s314_s2, %s314_s2 }
   0xb   :  { %p321_p3 = por %p320_p2, %p319_p1 }
   0xd   :  { %p322_p4 = pnand %p321_p3, %p315_p0 }
  0x7d   :  { %v22_v5 = vpop.permute.xlu0 %21 }
  0x7e   :  { %v35_v6 = vmul.f32 %v277_v3, %v22_v5 }
  0x80   :  { %v378_v7 = vadd.f32 %v278_v4, %v35_v6 }
  0x81   :  { %v27_v8 = vpop.permute.xlu0 %26 }
  0x82   :  { %v48_v9 = vand.u32 2147483647, %v378_v7  ;;  %v51_v10 = vand.u32 2139095040, %v378_v7  ;;  %v36_v11 = vmul.f32 %v277_v3, %v27_v8  ;;  %vm50_vm14 = vcmp.lt.s32.totalorder %v378_v7, 0 }
  0x84   :  { %v52_v12 = vshrl.u32 %v51_v10, 23  ;;  %v382_v13 = vadd.f32 %v278_v4, %v36_v11  ;;  %v55_v14 = vand.u32 8388607, %v48_v9  ;;  %vm49_vm15 = vcmp.le.f32.partialorder %v48_v9, 0.7853982 }
  0x86   :  { %v279_v15 = vadd.s32 4294967169, %v52_v12  ;;  %v155_v16 = vand.u32 2139095040, %v382_v13  ;;  %v56_v18 = vor.u32 8388608, %v55_v14  ;;  %v152_v20 = vand.u32 2147483647, %v382_v13 }
  0x88   :  { %v58_v17 = vadd.s32 1, %v279_v15  ;;  %v156_v19 = vshrl.u32 %v155_v16, 23  ;;  %v388_v25 = vshll.u32 %v56_v18, 8  ;;  %v159_v29 = vand.u32 8388607, %v152_v20 }
  0x8a   :  { %vm59_vm0 = vcmp.gt.s32.totalorder %v58_v17, 0  ;;  %v283_v22 = vadd.s32 4294967169, %v156_v19  ;;  %v160_v59 = vor.u32 8388608, %v159_v29 }
  0x8b   :  { %v60_v21 = vsel %vm59_vm0, %v58_v17, 0  ;;  %vm154_vm0 = vcmp.lt.s32.totalorder %v382_v13, 0 }
  0x8c   :  { %v61_v23 = vshrl.u32 %v60_v21, 5  ;;  %v62_v24 = vand.u32 31, %v60_v21  ;;  %v162_v30 = vadd.s32 1, %v283_v22  ;;  %v200_v10 = vshll.u32 %v160_v59, 8 }
  0x8e   :  { %v63_v26 = vsub.s32 32, %v62_v24  ;;  %v65_v28 = vshll.u32 %v337_v27, %v62_v24  ;;  %v68_v32 = vshll.u32 %v338_v31, %v62_v24  ;;  %v71_v34 = vshll.u32 %v339_v33, %v62_v24 }
  0x8f   :  { %v74_v36 = vshll.u32 %v340_v35, %v62_v24  ;;  %v77_v38 = vshll.u32 %v341_v37, %v62_v24  ;;  %vm80_vm1 = vcmp.lt.s32.totalorder %v61_v23, 1  ;;  %vm82_vm2 = vcmp.lt.s32.totalorder %v61_v23, 3 }
  0x90   :  { %v66_v39 = vshrl.u32 %v338_v31, %v63_v26  ;;  %v69_v40 = vshrl.u32 %v339_v33, %v63_v26  ;;  %v72_v41 = vshrl.u32 %v340_v35, %v63_v26  ;;  %v64_v42 = vshrl.u32 %v337_v27, %v63_v26 }
  0x91   :  { %v75_v43 = vshrl.u32 %v341_v37, %v63_v26  ;;  %v78_v45 = vshrl.u32 %v342_v44, %v63_v26  ;;  %vm163_vm3 = vcmp.gt.s32.totalorder %v162_v30, 0  ;;  %vm83_vm4 = vcmp.lt.s32.totalorder %v61_v23, 4 }
  0x92   :  { %v67_v46 = vor.u32 %v66_v39, %v65_v28  ;;  %v70_v47 = vor.u32 %v69_v40, %v68_v32  ;;  %v73_v48 = vor.u32 %v72_v41, %v71_v34  ;;  %v164_v51 = vsel %vm163_vm3, %v162_v30, 0 }
  0x93   :  { %v76_v49 = vor.u32 %v75_v43, %v74_v36  ;;  %v79_v50 = vor.u32 %v78_v45, %v77_v38  ;;  %vm81_vm5 = vcmp.lt.s32.totalorder %v61_v23, 2  ;;  %v166_v62 = vand.u32 31, %v164_v51 }
  0x94   :  { %v84_v52 = vsel %vm80_vm1, %v64_v42, %v67_v46  ;;  %v85_v53 = vsel %vm83_vm4, %v73_v48, 2102212464  ;;  %v88_v54 = vsel %vm80_vm1, %v67_v46, %v70_v47  ;;  %v92_v55 = vsel %vm80_vm1, %v70_v47, %v73_v48 }
  0x95   :  { %v86_v56 = vsel %vm82_vm2, %v70_v47, %v85_v53  ;;  %v89_v57 = vsel %vm83_vm4, %v76_v49, 920167782  ;;  %v93_v58 = vsel %vm83_vm4, %v79_v50, 1326507024  ;;  %v165_v6 = vshrl.u32 %v164_v51, 5 }
  0x96   :  { %v90_v60 = vsel %vm82_vm2, %v73_v48, %v89_v57  ;;  %v94_v61 = vsel %vm82_vm2, %v76_v49, %v93_v58  ;;  %v87_v63 = vsel %vm81_vm5, %v84_v52, %v86_v56  ;;  %v167_v8 = vsub.s32 32, %v166_v62 }
  0x97   :  { %v91_v0 = vsel %vm81_vm5, %v88_v54, %v90_v60  ;;  %v95_v1 = vsel %vm81_vm5, %v92_v55, %v94_v61  ;;  %v103_v11 = vmul.u32 %v388_v25, %v87_v63  ;;  %v169_v12 = vshll.u32 %v337_v27, %v166_v62 }
  0x98   :  { %v401_v2 = vmul.u32.u64.low %v388_v25, %v95_v1  ;;  %v402_v3 = vmul.u32.u64.high %v388_v25, %v95_v1, %v401_v2  ;;  %v405_v4 = vmul.u32.u64.low %v388_v25, %v91_v0  ;;  %v406_v5 = vmul.u32.u64.high %v388_v25, %v91_v0, %v405_v4 }
  0x99   :  { %v172_v14 = vshll.u32 %v338_v31, %v166_v62  ;;  %v175_v15 = vshll.u32 %v339_v33, %v166_v62  ;;  %v170_v16 = vshrl.u32 %v338_v31, %v167_v8  ;;  %v173_v17 = vshrl.u32 %v339_v33, %v167_v8 }
  0x9a   :  { %v176_v18 = vshrl.u32 %v340_v35, %v167_v8  ;;  %v178_v19 = vshll.u32 %v340_v35, %v166_v62  ;;  %vm105_vm6 = vc.u32 %v402_v3, %v405_v4  ;;  %v106_v21 = vadd.s32 1, %v406_v5 }
  0x9b   :  { %v179_v22 = vshrl.u32 %v341_v37, %v167_v8  ;;  %v181_v23 = vshll.u32 %v341_v37, %v166_v62  ;;  %v171_v24 = vor.u32 %v170_v16, %v169_v12  ;;  %v174_v26 = vor.u32 %v173_v17, %v172_v14 }
  0x9c   :  { %v177_v28 = vor.u32 %v176_v18, %v175_v15  ;;  %v182_v29 = vshrl.u32 %v342_v44, %v167_v8  ;;  %v107_v25 = vsel %vm105_vm6, %v106_v21, %v406_v5  ;;  %vm184_vm7 = vcmp.lt.s32.totalorder %v165_v6, 1 }
  0x9d   :  { %v180_v30 = vor.u32 %v179_v22, %v178_v19  ;;  %vm187_vm8 = vcmp.lt.s32.totalorder %v165_v6, 4  ;;  %v108_v31 = vadd.s32 %v107_v25, %v103_v11  ;;  %vm186_vm9 = vcmp.lt.s32.totalorder %v165_v6, 3 }
  0x9e   :  { %v183_v32 = vor.u32 %v182_v29, %v181_v23  ;;  %v189_v33 = vsel %vm187_vm8, %v177_v28, 2102212464  ;;  %v168_v34 = vshrl.u32 %v337_v27, %v167_v8  ;;  %v192_v35 = vsel %vm184_vm7, %v171_v24, %v174_v26 }
  0x9f   :  { %v193_v36 = vsel %vm187_vm8, %v180_v30, 920167782  ;;  %v196_v38 = vsel %vm184_vm7, %v174_v26, %v177_v28  ;;  %v109_v39 = vadd.s32 536870912, %v108_v31  ;;  %vm185_vm10 = vcmp.lt.s32.totalorder %v165_v6, 2 }
  0xa0   :  { %v194_v37 = vsel %vm186_vm9, %v177_v28, %v193_v36  ;;  %v197_v40 = vsel %vm187_vm8, %v183_v32, 1326507024  ;;  %v188_v41 = vsel %vm184_vm7, %v168_v34, %v171_v24  ;;  %v190_v42 = vsel %vm186_vm9, %v174_v26, %v189_v33 }
  0xa1   :  { %v195_v43 = vsel %vm185_vm10, %v192_v35, %v194_v37  ;;  %v198_v44 = vsel %vm186_vm9, %v180_v30, %v197_v40  ;;  %v110_v45 = vshrl.u32 %v109_v39, 30  ;;  %v191_v51 = vsel %vm185_vm10, %v188_v41, %v190_v42 }
  0xa2   :  { %v199_v46 = vsel %vm185_vm10, %v196_v38, %v198_v44  ;;  %v416_v47 = vmul.u32.u64.low %v200_v10, %v195_v43  ;;  %v417_v48 = vmul.u32.u64.high %v200_v10, %v195_v43, %v416_v47  ;;  %v207_v54 = vmul.u32 %v200_v10, %v191_v51 }
  0xa3   :  { %v419_v49 = vmul.u32.u64.low %v200_v10, %v199_v46  ;;  %v420_v50 = vmul.u32.u64.high %v200_v10, %v199_v46, %v419_v49  ;;  %v111_v27 = vshll.u32 %v110_v45, 30  ;;  %v104_v2 = vadd.s32 %v405_v4, %v402_v3 }
  0xa4   :  { %v210_v53 = vadd.s32 1, %v417_v48  ;;  %vm435_vm1 = vcmp.le.f32.partialorder %v152_v20, 0.7853982  ;;  %vm140_vm6 = vweird.f32 %v378_v7  ;;  %vm258_vm7 = vcmask 261120  }
  0xa5   :  { %v112_v52 = vsub.s32 %v108_v31, %v111_v27  ;;  %vm209_vm11 = vc.u32 %v420_v50, %v416_v47  ;;  %v208_v26 = vadd.s32 %v416_v47, %v420_v50  ;;  %v134_v31 = vsub.s32 4, %v110_v45 }
  0xa6   :  { %v211_v56 = vsel %vm209_vm11, %v210_v53, %v417_v48  ;;  %v45_v47 = vlaneseq  ;;  %vm244_vm11 = vweird.f32 %v382_v13 }
  0xa7   :  { %v114_v55 = vsub.s32 0, %v112_v52  ;;  %v212_v57 = vadd.s32 %v211_v56, %v207_v54  ;;  %v135_v38 = vsel %vm50_vm14, %v134_v31, %v110_v45 }
  0xa8   :  { %v137_v40 = vsel %vm49_vm15, 0, %v135_v38  ;;  %v46_v27 = vand.u32 127, %v45_v47 }
  0xa9   :  { %v280_v58 = vmin.u32 %v114_v55, %v112_v52  ;;  %v213_v59 = vadd.s32 536870912, %v212_v57  ;;  %v141_v43 = vadd.s32 3, %v137_v40 }
  0xaa   :  { %vm47_vm4 = vcmp.lt.s32.totalorder %v46_v27, 31 }
  0xab   :  { %v116_v60 = vclz %v280_v58  ;;  %v214_v61 = vshrl.u32 %v213_v59, 30  ;;  %v142_v48 = vand.u32 3, %v141_v43 }
  0xad   :  { %v281_v62 = vadd.s32 4294967294, %v116_v60  ;;  %v215_v63 = vshll.u32 %v214_v61, 30  ;;  %v238_v44 = vsub.s32 4, %v214_v61  ;;  %vm147_vm2 = vcmp.eq.s32.totalorder %v142_v48, 2 }
  0xae   :  { %vm144_vm3 = vcmp.eq.s32.totalorder %v142_v48, 0  ;;  %vm143_vm5 = vcmp.lt.s32.totalorder %v142_v48, 2 }
  0xaf   :  { %vm282_vm12 = vcmp.lt.s32.totalorder %v281_v62, 0  ;;  %v216_v1 = vsub.s32 %v212_v57, %v215_v63  ;;  %v239_v49 = vsel %vm154_vm0, %v238_v44, %v214_v61 }
  0xb0   :  { %v119_v0 = vsel %vm282_vm12, 0, %v281_v62  ;;  %v241_v20 = vsel %vm435_vm1, 0, %v239_v49 }
  0xb1   :  { %v120_v5 = vsub.s32 32, %v119_v0  ;;  %v124_v6 = vsub.s32 4294967266, %v119_v0  ;;  %v218_v8 = vsub.s32 0, %v216_v1  ;;  %v121_v10 = vshll.u32 %v112_v52, %v119_v0 }
  0xb2   :  { %v245_v57 = vadd.s32 3, %v241_v20 }
  0xb3   :  { %v122_v11 = vshrl.u32 %v104_v2, %v120_v5  ;;  %v125_v12 = vadd.s32 127, %v124_v6  ;;  %v284_v14 = vmin.u32 %v218_v8, %v216_v1 }
  0xb4   :  { %v246_v60 = vand.u32 3, %v245_v57 }
  0xb5   :  { %v123_v15 = vor.u32 %v122_v11, %v121_v10  ;;  %v126_v16 = vshll.u32 %v125_v12, 23  ;;  %v220_v17 = vclz %v284_v14 }
  0xb6   :  { %vm251_vm8 = vcmp.eq.s32.totalorder %v246_v60, 2  ;;  %vm248_vm9 = vcmp.eq.s32.totalorder %v246_v60, 0  ;;  %vm247_vm10 = vcmp.lt.s32.totalorder %v246_v60, 2 }
  0xb7   :  { %v127_v18 = vor.u32 4788187, %v126_v16  ;;  %v285_v19 = vadd.s32 4294967294, %v220_v17  ;;  %v130_v22 = vcvt.s32.f32 %v123_v15 }
  0xb9   :  { %v128_v21 = vand.u32 2147483647, %v127_v18  ;;  %vm286_vm13 = vcmp.lt.s32.totalorder %v285_v19, 0 }
  0xba   :  { %v223_v24 = vsel %vm286_vm13, 0, %v285_v19 }
  0xbb   :  { %v131_v23 = vmul.f32 %v130_v22, %v128_v21  ;;  %v224_v3 = vsub.s32 32, %v223_v24  ;;  %v228_v4 = vsub.s32 4294967266, %v223_v24  ;;  %v225_v29 = vshll.u32 %v216_v1, %v223_v24 }
  0xbd   :  { %v132_v28 = vxor.u32 2147483648, %v131_v23  ;;  %v226_v25 = vshrl.u32 %v208_v26, %v224_v3  ;;  %v229_v30 = vadd.s32 127, %v228_v4 }
  0xbf   :  { %v133_v32 = vsel %vm50_vm14, %v132_v28, %v131_v23  ;;  %v227_v34 = vor.u32 %v226_v25, %v225_v29  ;;  %v230_v35 = vshll.u32 %v229_v30, 23 }
  0xc0   :  { %v136_v33 = vsel %vm49_vm15, %v378_v7, %v133_v32 }
  0xc1   :  { %306 = vcosq.f32 %v136_v33  ;;  %v231_v36 = vor.u32 4788187, %v230_v35  ;;  %v234_v37 = vcvt.s32.f32 %v227_v34 }
  0xc2   :  { %308 = vsinq.f32 %v136_v33 }
  0xc3   :  { %v232_v39 = vand.u32 2147483647, %v231_v36 }
  0xc5   :  { %v235_v41 = vmul.f32 %v234_v37, %v232_v39 }
  0xc7   :  { %v236_v42 = vxor.u32 2147483648, %v235_v41 }
  0xc9   :  { %v237_v46 = vsel %vm154_vm0, %v236_v42, %v235_v41 }
  0xca   :  { %v240_v45 = vsel %vm435_vm1, %v382_v13, %v237_v46 }
  0xcb   :  { %310 = vcosq.f32 %v240_v45 }
  0xcc   :  { %312 = vsinq.f32 %v240_v45 }
  0xce   :  { %v307_v50 = vpop.eup %306 }
  0xcf   :  { %v309_v51 = vpop.eup %308  ;;  %v148_v52 = vxor.u32 2147483648, %v307_v50 }
  0xd0   :  { %v145_v53 = vxor.u32 2147483648, %v309_v51 }
  0xd1   :  { %v149_v54 = vsel %vm147_vm2, %v148_v52, %v309_v51 }
  0xd2   :  { %v146_v55 = vsel %vm144_vm3, %v307_v50, %v145_v53 }
  0xd3   :  { %v150_v56 = vsel %vm143_vm5, %v146_v55, %v149_v54 }
  0xd4   :  { %v151_v58 = vsel %vm140_vm6, nan, %v150_v56 }
  0xd5   :  { %v256_v59 = vsel %vm47_vm4, %v151_v58, %v378_v7 }
  0xd6   :  { %259 = vst.msk [vmem:[#allocation2] sm:$0xff] %vm258_vm7, %v256_v59 }
  0xd8   :  { %v311_v61 = vpop.eup %310 }
  0xd9   :  { %v313_v62 = vpop.eup %312  ;;  %v252_v63 = vxor.u32 2147483648, %v311_v61 }
  0xda   :  { %v249_v0 = vxor.u32 2147483648, %v313_v62 }
  0xdb   :  { %v253_v1 = vsel %vm251_vm8, %v252_v63, %v313_v62 }
  0xdc   :  { %v250_v2 = vsel %vm248_vm9, %v311_v61, %v249_v0 }
  0xdd   :  { %v254_v5 = vsel %vm247_vm10, %v250_v2, %v253_v1 }
  0xde   :  { %v255_v6 = vsel %vm244_vm11, nan, %v254_v5 }
  0xdf   :  { %v257_v7 = vsel %vm47_vm4, %v255_v6, %v382_v13 }
  0xe0   :  { %260 = vst.msk [vmem:[#allocation2 + $0x8] sm:$0xff] %vm258_vm7, %v257_v7 }
  0xe1   :  { %325 = shalt.err (!%p322_p4)
}
  0xe2   :  { %s344_s20 = smov 128   ;;  %s345_s21 = smov 8  }
  0xe3   :  { %272 = dma.vmem_to_hbm [thread:$0]  %s267_s1, 256, %s458_s3, [#allocation3], %s344_s20, %s344_s20, %s345_s21  }
  0xe4   :  { %334 = dma.done.wait [#allocation3], 256  }
  0xe5   :  { %335 = vsyncadd [#allocation3], 4294967040 }
  0xe6   :  { %276 = vsyncpa [#allocation3], 1 }

</bundles_post_ra>
